<compile_context>
chip_gen: v6e
topology: v6e:2x2x1
jax: 0.10.0
libtpu: 0.0.40
codegen_flags: <defaults>
</compile_context>

<pallas_src>
import functools
import math

import jax
import jax.numpy as jnp
from jax.experimental import pallas as pl
from jax.experimental.pallas import tpu as pltpu


_NEG_BIG = -1e30  # large finite negative instead of -inf (NaN-safe masking)


def _round_up(x, m):
    return ((x + m - 1) // m) * m


def _pad_to(x, shape, value=0):
    pads = [(0, t - s) for s, t in zip(x.shape, shape)]
    if all(p == (0, 0) for p in pads):
        return x
    return jnp.pad(x, pads, constant_values=value)


def _flash_attn_kernel(*refs, mask_mode, needs_kv_iota_mask, lk, tkv):
    if mask_mode is None:
        qn_ref, knt_ref, vn_ref, o_ref, m_scr, l_scr, acc_scr = refs
        mask_ref = None
    else:
        qn_ref, knt_ref, vn_ref, mask_ref, o_ref, m_scr, l_scr, acc_scr = refs

    ki = pl.program_id(2)

    @pl.when(ki == 0)
    def _init():
        m_scr[...] = jnp.full_like(m_scr, _NEG_BIG)
        l_scr[...] = jnp.zeros_like(l_scr)
        acc_scr[...] = jnp.zeros_like(acc_scr)

    # Scores: plain NN matmul (K projection pre-transposed in the wrapper).
    # bf16 operands, f32 accumulation on the MXU. Scale already folded into qn.
    s = jnp.dot(qn_ref[0], knt_ref[0],
                preferred_element_type=jnp.float32)          # (tq, tkv) f32

    if mask_mode == "full":
        s = jnp.where(mask_ref[0] != 0, s, _NEG_BIG)          # (tq, tkv) int8
    elif mask_mode == "row":
        s = s + mask_ref[0]                                   # (1, tkv) f32 bias
    elif needs_kv_iota_mask:
        # Only active when lk is not a tile multiple; constant iota vs scalar.
        col = jax.lax.broadcasted_iota(jnp.int32, s.shape, 1)
        s = jnp.where(col < lk - ki * tkv, s, _NEG_BIG)

    # Online softmax update (all f32).
    m_prev = m_scr[...]
    m_new = jnp.maximum(m_prev, jnp.max(s, axis=-1, keepdims=True))
    alpha = jnp.exp(m_prev - m_new)
    p = jnp.exp(s - m_new)
    l_scr[...] = alpha * l_scr[...] + jnp.sum(p, axis=-1, keepdims=True)
    acc_scr[...] = alpha * acc_scr[...] + jnp.dot(
        p.astype(jnp.bfloat16), vn_ref[0], preferred_element_type=jnp.float32)
    m_scr[...] = m_new

    @pl.when(ki == pl.num_programs(2) - 1)
    def _finalize():
        inv_l = pl.reciprocal(l_scr[...], approx=True)
        o_ref[0] = (acc_scr[...] * inv_l).astype(o_ref.dtype)


def attention_pallas(query, key, value, wq, wk, wv, attention_mask=None,
                     *, tq_max=512, tkv_max=1024):
    """query: (N, ..., lq, dq), key: (N, ..., lk, dq), value: (N, ..., lk, dv).
    wq, wk: (dq, n_ed), wv: (dv, n_ev). attention_mask broadcastable to
    (N, ..., lq, lk) with 0 == masked-out (matches the PyTorch module)."""
    orig_dtype = query.dtype
    *lead, lq, dq = query.shape
    lk = key.shape[-2]
    dv = value.shape[-1]
    n_ed = wq.shape[-1]
    n_ev = wv.shape[-1]
    B = math.prod(lead) if lead else 1

    q3 = query.reshape(B, lq, dq)
    k3 = key.reshape(B, lk, dq)
    v3 = value.reshape(B, lk, dv)

    # ---- Tile selection (tq %8; tkv either full padded kv len or %128). ----
    tq = min(tq_max, _round_up(lq, 8))
    lq_pad = _round_up(lq, tq)
    # Guarantee >=2 parallel work items for 2-TensorCore chips (v7x).
    if B * (lq_pad // tq) < 2:
        half = _round_up((lq + 1) // 2, 8)
        if half < tq:
            tq = half
            lq_pad = _round_up(lq, tq)
    tkv = min(tkv_max, _round_up(lk, 8))
    lk_pad = _round_up(lk, tkv)
    n_ev_pad = _round_up(n_ev, 128)          # lane-dense output stores
    num_q_tiles = lq_pad // tq
    num_kv_tiles = lk_pad // tkv

    scale = 1.0 / math.sqrt(float(n_ed))

    # ---- Hoisted projections: done ONCE in XLA, not once per q-tile. ----
    qn = (q3 @ wq) * scale                                  # (B, lq, n_ed) f32
    qn = _pad_to(qn, (B, lq_pad, n_ed)).astype(jnp.bfloat16)
    knt = jnp.swapaxes(k3 @ wk, -1, -2)                     # (B, n_ed, lk)
    knt = _pad_to(knt, (B, n_ed, lk_pad)).astype(jnp.bfloat16)
    vn = v3 @ wv                                            # (B, lk, n_ev)
    vn = _pad_to(vn, (B, lk_pad, n_ev_pad)).astype(jnp.bfloat16)

    # ---- Mask preparation (avoid materializing the full broadcast). ----
    mask_mode = None
    mask_arr = None
    mask_spec = None
    if attention_mask is not None:
        m = attention_mask
        full_rank = len(lead) + 2
        if m.ndim < full_rank:
            m = m.reshape((1,) * (full_rank - m.ndim) + m.shape)
        if m.shape[-1] == 1:
            m = jnp.broadcast_to(m, m.shape[:-1] + (lk,))
        lead_bcast = all(d == 1 for d in m.shape[:-2])
        if m.shape[-2] == 1:
            # Key-padding style mask: tiny additive f32 bias row per batch.
            mask_mode = "row"
            if lead_bcast:
                row = m.reshape(1, 1, lk)
            else:
                row = jnp.broadcast_to(m, (*lead, 1, lk)).reshape(B, 1, lk)
            bias = jnp.where(row == 0, _NEG_BIG, 0.0).astype(jnp.float32)
            mask_arr = _pad_to(bias, (bias.shape[0], 1, lk_pad), value=_NEG_BIG)
            if mask_arr.shape[0] == 1:
                mask_spec = pl.BlockSpec((1, 1, tkv), lambda n, qi, ki: (0, 0, ki))
            else:
                mask_spec = pl.BlockSpec((1, 1, tkv), lambda n, qi, ki: (n, 0, ki))
        else:
            # Genuine 2-D mask: compact int8; keep a single copy if the batch
            # dims broadcast (block-0 index_map) instead of duplicating in HBM.
            mask_mode = "full"
            if lead_bcast:
                m2 = jnp.broadcast_to(
                    m, (*((1,) * len(lead)), lq, lk)).reshape(1, lq, lk)
            else:
                m2 = jnp.broadcast_to(m, (*lead, lq, lk)).reshape(B, lq, lk)
            m2 = (m2 != 0).astype(jnp.int8)
            mask_arr = _pad_to(m2, (m2.shape[0], lq_pad, lk_pad))  # pads masked
            if mask_arr.shape[0] == 1:
                mask_spec = pl.BlockSpec((1, tq, tkv), lambda n, qi, ki: (0, qi, ki))
            else:
                mask_spec = pl.BlockSpec((1, tq, tkv), lambda n, qi, ki: (n, qi, ki))

    inputs = [qn, knt, vn]
    in_specs = [
        pl.BlockSpec((1, tq, n_ed), lambda n, qi, ki: (n, qi, 0)),
        pl.BlockSpec((1, n_ed, tkv), lambda n, qi, ki: (n, 0, ki)),
        pl.BlockSpec((1, tkv, n_ev_pad), lambda n, qi, ki: (n, ki, 0)),
    ]
    if mask_mode is not None:
        inputs.append(mask_arr)
        in_specs.append(mask_spec)

    grid = (B, num_q_tiles, num_kv_tiles)

    # ---- VMEM budget: computed from the real footprint + headroom. ----
    out_isz = jnp.dtype(orig_dtype).itemsize
    vmem = 2 * tq * n_ed * 2                      # qn tile (double-buffered)
    vmem += 2 * n_ed * tkv * 2                    # knT tile
    vmem += 2 * tkv * n_ev_pad * 2                # vn tile
    if mask_mode == "full":
        vmem += 2 * tq * tkv                      # int8 mask tile
    elif mask_mode == "row":
        vmem += 2 * tkv * 4                       # f32 bias row
    vmem += 2 * tq * n_ev_pad * out_isz           # output tile
    vmem += tq * n_ev_pad * 4 + 2 * tq * 4        # acc / m / l scratch
    vmem += 3 * tq * tkv * 4                      # s / p f32 intermediates
    vmem_limit = max(24 << 20, min(int(vmem * 1.5) + (8 << 20), 64 << 20))

    # ---- Cost estimate so XLA schedules the hoisted projections around us. ----
    mask_bytes = 0 if mask_arr is None else int(mask_arr.nbytes)
    cost = pl.CostEstimate(
        flops=int(2 * B * lq_pad * lk_pad * (n_ed + n_ev_pad)
                  + 8 * B * lq_pad * lk_pad),
        transcendentals=int(B * lq_pad * lk_pad + B * lq_pad * num_kv_tiles),
        bytes_accessed=int(qn.nbytes + num_q_tiles * (knt.nbytes + vn.nbytes)
                           + mask_bytes + B * lq_pad * n_ev_pad * out_isz),
    )

    kernel = functools.partial(
        _flash_attn_kernel,
        mask_mode=mask_mode,
        needs_kv_iota_mask=(mask_mode is None) and (lk_pad > lk),
        lk=lk,
        tkv=tkv,
    )

    out = pl.pallas_call(
        kernel,
        out_shape=jax.ShapeDtypeStruct((B, lq_pad, n_ev_pad), orig_dtype),
        grid_spec=pltpu.PrefetchScalarGridSpec(
            num_scalar_prefetch=0,
            grid=grid,
            in_specs=in_specs,
            out_specs=pl.BlockSpec((1, tq, n_ev_pad), lambda n, qi, ki: (n, qi, 0)),
            scratch_shapes=[
                pltpu.VMEM((tq, 1), jnp.float32),        # running max m
                pltpu.VMEM((tq, 1), jnp.float32),        # running denom l
                pltpu.VMEM((tq, n_ev_pad), jnp.float32), # output accumulator
            ],
        ),
        compiler_params=pltpu.CompilerParams(
            dimension_semantics=("parallel", "parallel", "arbitrary"),
            vmem_limit_bytes=vmem_limit,
        ),
        cost_estimate=cost,
    )(*inputs)

    out = out[:, :lq, :n_ev]
    return out.reshape(*lead, lq, n_ev)


def attention_reference(query, key, value, wq, wk, wv, attention_mask=None):
    """Pure-JAX f32 reference matching the PyTorch forward."""
    qn = query @ wq
    kn = key @ wk
    vn = value @ wv
    scores = qn @ jnp.swapaxes(kn, -2, -1)
    scores = scores / jnp.sqrt(jnp.asarray(qn.shape[-1], jnp.float32))
    if attention_mask is not None:
        scores = jnp.where(attention_mask == 0, _NEG_BIG, scores)
    w = jax.nn.softmax(scores, axis=-1)
    return w @ vn


# TODO(synk): the PyTorch module's host-side `torch.isnan(output).any()` debug
# print has no in-kernel equivalent and is intentionally omitted; fully-masked
# rows yield a finite uniform average here instead of NaN.

if __name__ == "__main__":
    key0 = jax.random.PRNGKey(0)
    (kq, kk, kv, km,
     kq2, kk2, kv2,
     kq3, kk3, kv3, km3) = jax.random.split(key0, 11)

    ed, ev = 32, 16
    n_ed, n_ev = ed, ev
    wq = jnp.eye(ed, n_ed, dtype=jnp.float32)   # torch.eye init
    wk = jnp.eye(ed, n_ed, dtype=jnp.float32)
    wv = jnp.eye(ev, n_ev, dtype=jnp.float32)

    # ---- Test 1: small shapes with an explicit 2-D mask (single tile). ----
    N, lq, lk = 2, 8, 8
    query = jax.random.normal(kq, (N, lq, ed), dtype=jnp.float32)
    key_ = jax.random.normal(kk, (N, lk, ed), dtype=jnp.float32)
    value = jax.random.normal(kv, (N, lk, ev), dtype=jnp.float32)
    mask = (jax.random.uniform(km, (N, lq, lk)) > 0.3).astype(jnp.float32)
    mask = mask.at[:, :, 0].set(1.0)            # every row attends somewhere

    out = jax.block_until_ready(attention_pallas(query, key_, value, wq, wk, wv, mask))
    ref = attention_reference(query, key_, value, wq, wk, wv, mask)
    assert out.shape == (N, lq, n_ev)
    assert jnp.allclose(out, ref, atol=5e-2, rtol=5e-2), "test1 mismatch"

    # ---- Test 2: non-multiple lengths, no mask (multi q-tile path). ----
    N2, lq2, lk2 = 1, 320, 640
    query2 = jax.random.normal(kq2, (N2, lq2, ed), dtype=jnp.float32)
    key2 = jax.random.normal(kk2, (N2, lk2, ed), dtype=jnp.float32)
    value2 = jax.random.normal(kv2, (N2, lk2, ev), dtype=jnp.float32)

    out2 = jax.block_until_ready(attention_pallas(query2, key2, value2, wq, wk, wv, None))
    ref2 = attention_reference(query2, key2, value2, wq, wk, wv, None)
    assert out2.shape == (N2, lq2, n_ev)
    assert jnp.allclose(out2, ref2, atol=5e-2, rtol=5e-2), "test2 mismatch"

    # ---- Test 3: key-padding (row) mask, padded + multi kv-tile path. ----
    N3, lq3, lk3 = 2, 128, 1300
    query3 = jax.random.normal(kq3, (N3, lq3, ed), dtype=jnp.float32)
    key3 = jax.random.normal(kk3, (N3, lk3, ed), dtype=jnp.float32)
    value3 = jax.random.normal(kv3, (N3, lk3, ev), dtype=jnp.float32)
    mask3 = (jax.random.uniform(km3, (N3, 1, lk3)) > 0.2).astype(jnp.float32)
    mask3 = mask3.at[:, :, 0].set(1.0)

    out3 = jax.block_until_ready(attention_pallas(query3, key3, value3, wq, wk, wv, mask3))
    ref3 = attention_reference(query3, key3, value3, wq, wk, wv, mask3)
    assert out3.shape == (N3, lq3, n_ev)
    assert jnp.allclose(out3, ref3, atol=5e-2, rtol=5e-2), "test3 mismatch"

    print("KERNEL_OK")
</pallas_src>

<mosaic_0001>
module attributes {stable_mosaic.version = 11 : i64} {
  func.func @_flash_attn_kernel(%arg0: i32, %arg1: i32, %arg2: i32, %arg3: memref<1x8x32xbf16, #tpu.memory_space<vmem>>, %arg4: memref<1x32x8xbf16, #tpu.memory_space<vmem>>, %arg5: memref<1x8x128xbf16, #tpu.memory_space<vmem>>, %arg6: memref<1x8x8xi8, #tpu.memory_space<vmem>>, %arg7: memref<1x8x128xf32, #tpu.memory_space<vmem>>, %arg8: memref<8x1xf32, #tpu.memory_space<vmem>>, %arg9: memref<8x1xf32, #tpu.memory_space<vmem>>, %arg10: memref<8x128xf32, #tpu.memory_space<vmem>>) attributes {dimension_semantics = [#tpu.dimension_semantics<parallel>, #tpu.dimension_semantics<parallel>, #tpu.dimension_semantics<arbitrary>], iteration_bounds = array<i64: 2, 1, 1>, scalar_prefetch = 0 : i64, scratch_operands = 3 : i64, tpu.core_type = #tpu.core_type<tc>, window_params = [{transform_indices = @transform_0, window_bounds = array<i64: 1, 8, 32>}, {transform_indices = @transform_1, window_bounds = array<i64: 1, 32, 8>}, {transform_indices = @transform_2, window_bounds = array<i64: 1, 8, 128>}, {transform_indices = @transform_3, window_bounds = array<i64: 1, 8, 8>}, {transform_indices = @transform_4, window_bounds = array<i64: 1, 8, 128>}]} {
    %c0_i32 = arith.constant 0 : i32
    %0 = arith.cmpi eq, %arg2, %c0_i32 : i32
    %1 = arith.extui %0 : i1 to i32
    %c0_i32_0 = arith.constant 0 : i32
    %2 = arith.cmpi ne, %1, %c0_i32_0 : i32
    scf.if %2 {
      %cst_30 = arith.constant -1.000000e+30 : f32
      %42 = vector.broadcast %cst_30 : f32 to vector<8x1xf32>
      %c0_31 = arith.constant 0 : index
      %c0_32 = arith.constant 0 : index
      %43 = vector.load %arg8[%c0_31, %c0_32] : memref<8x1xf32, #tpu.memory_space<vmem>>, vector<8x1xf32>
      tpu.vector_store %arg8[%c0_31, %c0_32], %42 {strides = array<i32>} : memref<8x1xf32, #tpu.memory_space<vmem>>, vector<8x1xf32>,
      %cst_33 = arith.constant 0.000000e+00 : f32
      %44 = vector.broadcast %cst_33 : f32 to vector<8x1xf32>
      %c0_34 = arith.constant 0 : index
      %c0_35 = arith.constant 0 : index
      %45 = vector.load %arg9[%c0_34, %c0_35] : memref<8x1xf32, #tpu.memory_space<vmem>>, vector<8x1xf32>
      tpu.vector_store %arg9[%c0_34, %c0_35], %44 {strides = array<i32>} : memref<8x1xf32, #tpu.memory_space<vmem>>, vector<8x1xf32>,
      %cst_36 = arith.constant 0.000000e+00 : f32
      %46 = vector.broadcast %cst_36 : f32 to vector<8x128xf32>
      %c0_37 = arith.constant 0 : index
      %c0_38 = arith.constant 0 : index
      %47 = vector.load %arg10[%c0_37, %c0_38] : memref<8x128xf32, #tpu.memory_space<vmem>>, vector<8x128xf32>
      tpu.vector_store %arg10[%c0_37, %c0_38], %46 {strides = array<i32>} : memref<8x128xf32, #tpu.memory_space<vmem>>, vector<8x128xf32>,
    } else {
    }
    %c0 = arith.constant 0 : index
    %c0_1 = arith.constant 0 : index
    %c0_2 = arith.constant 0 : index
    %3 = vector.load %arg3[%c0, %c0_1, %c0_2] : memref<1x8x32xbf16, #tpu.memory_space<vmem>>, vector<1x8x32xbf16>
    %4 = vector.shape_cast %3 : vector<1x8x32xbf16> to vector<8x32xbf16>
    %c0_3 = arith.constant 0 : index
    %c0_4 = arith.constant 0 : index
    %c0_5 = arith.constant 0 : index
    %5 = vector.load %arg4[%c0_3, %c0_4, %c0_5] : memref<1x32x8xbf16, #tpu.memory_space<vmem>>, vector<1x32x8xbf16>
    %6 = vector.shape_cast %5 : vector<1x32x8xbf16> to vector<32x8xbf16>
    %cst = arith.constant dense<0.000000e+00> : vector<8x8xf32>
    %7 = tpu.matmul %4, %6, %cst {dimension_numbers = #tpu.dot_dimension_numbers<[1], [0], [0], [1], [0, 0, 1, 1], [], []>} : vector<8x32xbf16>, vector<32x8xbf16>, vector<8x8xf32> -> vector<8x8xf32>
    %c0_6 = arith.constant 0 : index
    %c0_7 = arith.constant 0 : index
    %c0_8 = arith.constant 0 : index
    %8 = vector.load %arg6[%c0_6, %c0_7, %c0_8] : memref<1x8x8xi8, #tpu.memory_space<vmem>>, vector<1x8x8xi8>
    %9 = vector.shape_cast %8 : vector<1x8x8xi8> to vector<8x8xi8>
    %c0_i8 = arith.constant 0 : i8
    %10 = vector.broadcast %c0_i8 : i8 to vector<8x8xi8>
    %11 = arith.cmpi ne, %9, %10 : vector<8x8xi8>
    %cst_9 = arith.constant -1.000000e+30 : f32
    %12 = vector.broadcast %cst_9 : f32 to vector<8x8xf32>
    %13 = arith.select %11, %7, %12 : vector<8x8xi1>, vector<8x8xf32>
    %c0_10 = arith.constant 0 : index
    %c0_11 = arith.constant 0 : index
    %14 = vector.load %arg8[%c0_10, %c0_11] : memref<8x1xf32, #tpu.memory_space<vmem>>, vector<8x1xf32>
    %cst_12 = arith.constant dense<0xFF800000> : vector<8xf32>
    %15 = vector.multi_reduction <maximumf>, %13, %cst_12 [1] : vector<8x8xf32> to vector<8xf32>
    %16 = vector.shape_cast %15 : vector<8xf32> to vector<8x1xf32>
    %17 = arith.maximumf %14, %16 : vector<8x1xf32>
    %18 = arith.subf %14, %17 : vector<8x1xf32>
    %19 = math.exp %18 : vector<8x1xf32>
    %20 = vector.broadcast %17 : vector<8x1xf32> to vector<8x8xf32>
    %21 = arith.subf %13, %20 : vector<8x8xf32>
    %22 = math.exp %21 : vector<8x8xf32>
    %c0_13 = arith.constant 0 : index
    %c0_14 = arith.constant 0 : index
    %23 = vector.load %arg9[%c0_13, %c0_14] : memref<8x1xf32, #tpu.memory_space<vmem>>, vector<8x1xf32>
    %24 = arith.mulf %19, %23 : vector<8x1xf32>
    %cst_15 = arith.constant dense<0.000000e+00> : vector<8xf32>
    %25 = vector.multi_reduction <add>, %22, %cst_15 [1] : vector<8x8xf32> to vector<8xf32>
    %26 = vector.shape_cast %25 : vector<8xf32> to vector<8x1xf32>
    %27 = arith.addf %24, %26 : vector<8x1xf32>
    %c0_16 = arith.constant 0 : index
    %c0_17 = arith.constant 0 : index
    %28 = vector.load %arg9[%c0_16, %c0_17] : memref<8x1xf32, #tpu.memory_space<vmem>>, vector<8x1xf32>
    tpu.vector_store %arg9[%c0_16, %c0_17], %27 {strides = array<i32>} : memref<8x1xf32, #tpu.memory_space<vmem>>, vector<8x1xf32>,
    %c0_18 = arith.constant 0 : index
    %c0_19 = arith.constant 0 : index
    %29 = vector.load %arg10[%c0_18, %c0_19] : memref<8x128xf32, #tpu.memory_space<vmem>>, vector<8x128xf32>
    %30 = vector.broadcast %19 : vector<8x1xf32> to vector<8x128xf32>
    %31 = arith.mulf %30, %29 : vector<8x128xf32>
    %32 = arith.truncf %22 : vector<8x8xf32> to vector<8x8xbf16>
    %c0_20 = arith.constant 0 : index
    %c0_21 = arith.constant 0 : index
    %c0_22 = arith.constant 0 : index
    %33 = vector.load %arg5[%c0_20, %c0_21, %c0_22] : memref<1x8x128xbf16, #tpu.memory_space<vmem>>, vector<1x8x128xbf16>
    %34 = vector.shape_cast %33 : vector<1x8x128xbf16> to vector<8x128xbf16>
    %cst_23 = arith.constant dense<0.000000e+00> : vector<8x128xf32>
    %35 = tpu.matmul %32, %34, %cst_23 {dimension_numbers = #tpu.dot_dimension_numbers<[1], [0], [0], [1], [0, 0, 1, 1], [], []>} : vector<8x8xbf16>, vector<8x128xbf16>, vector<8x128xf32> -> vector<8x128xf32>
    %36 = arith.addf %31, %35 : vector<8x128xf32>
    %c0_24 = arith.constant 0 : index
    %c0_25 = arith.constant 0 : index
    %37 = vector.load %arg10[%c0_24, %c0_25] : memref<8x128xf32, #tpu.memory_space<vmem>>, vector<8x128xf32>
    tpu.vector_store %arg10[%c0_24, %c0_25], %36 {strides = array<i32>} : memref<8x128xf32, #tpu.memory_space<vmem>>, vector<8x128xf32>,
    %c0_26 = arith.constant 0 : index
    %c0_27 = arith.constant 0 : index
    %38 = vector.load %arg8[%c0_26, %c0_27] : memref<8x1xf32, #tpu.memory_space<vmem>>, vector<8x1xf32>
    tpu.vector_store %arg8[%c0_26, %c0_27], %17 {strides = array<i32>} : memref<8x1xf32, #tpu.memory_space<vmem>>, vector<8x1xf32>,
    %c0_i32_28 = arith.constant 0 : i32
    %39 = arith.cmpi eq, %arg2, %c0_i32_28 : i32
    %40 = arith.extui %39 : i1 to i32
    %c0_i32_29 = arith.constant 0 : i32
    %41 = arith.cmpi ne, %40, %c0_i32_29 : i32
    scf.if %41 {
      %c0_30 = arith.constant 0 : index
      %c0_31 = arith.constant 0 : index
      %42 = vector.load %arg9[%c0_30, %c0_31] : memref<8x1xf32, #tpu.memory_space<vmem>>, vector<8x1xf32>
      %43 = tpu.reciprocal %42 {approx = true} : vector<8x1xf32> -> vector<8x1xf32>
      %c0_32 = arith.constant 0 : index
      %c0_33 = arith.constant 0 : index
      %44 = vector.load %arg10[%c0_32, %c0_33] : memref<8x128xf32, #tpu.memory_space<vmem>>, vector<8x128xf32>
      %45 = vector.broadcast %43 : vector<8x1xf32> to vector<8x128xf32>
      %46 = arith.mulf %44, %45 : vector<8x128xf32>
      %c0_34 = arith.constant 0 : index
      %c0_35 = arith.constant 0 : index
      %c0_36 = arith.constant 0 : index
      %47 = vector.load %arg7[%c0_34, %c0_35, %c0_36] : memref<1x8x128xf32, #tpu.memory_space<vmem>>, vector<1x8x128xf32>
      %48 = vector.shape_cast %47 : vector<1x8x128xf32> to vector<8x128xf32>
      %49 = vector.shape_cast %46 : vector<8x128xf32> to vector<1x8x128xf32>
      tpu.vector_store %arg7[%c0_34, %c0_35, %c0_36], %49 {strides = array<i32>} : memref<1x8x128xf32, #tpu.memory_space<vmem>>, vector<1x8x128xf32>,
    } else {
    }
    return
  }
  func.func @transform_0(%arg0: i32, %arg1: i32, %arg2: i32) -> (i32, i32, i32) {
    %c0_i32 = arith.constant 0 : i32
    %c0_i32_0 = arith.constant 0 : i32
    return %arg0, %arg1, %c0_i32 : i32, i32, i32
  }
  func.func @transform_1(%arg0: i32, %arg1: i32, %arg2: i32) -> (i32, i32, i32) {
    %c0_i32 = arith.constant 0 : i32
    %c0_i32_0 = arith.constant 0 : i32
    return %arg0, %c0_i32, %arg2 : i32, i32, i32
  }
  func.func @transform_2(%arg0: i32, %arg1: i32, %arg2: i32) -> (i32, i32, i32) {
    %c0_i32 = arith.constant 0 : i32
    %c0_i32_0 = arith.constant 0 : i32
    return %arg0, %arg2, %c0_i32 : i32, i32, i32
  }
  func.func @transform_3(%arg0: i32, %arg1: i32, %arg2: i32) -> (i32, i32, i32) {
    %c0_i32 = arith.constant 0 : i32
    return %arg0, %arg1, %arg2 : i32, i32, i32
  }
  func.func @transform_4(%arg0: i32, %arg1: i32, %arg2: i32) -> (i32, i32, i32) {
    %c0_i32 = arith.constant 0 : i32
    %c0_i32_0 = arith.constant 0 : i32
    return %arg0, %arg1, %c0_i32 : i32, i32, i32
  }
}

</mosaic_0001>

<bundles_post_ra>
// kernel: tpu_custom_call.1
= control target key start
LH: loop header
LB: loop body
LE: loop exit
PB: predicated region body
PF: predicated region fallthrough
CT: control target
= control target key end

     0   :  { %9 = vsyncpa [#allocation6], 0  ;;  %s978_s0 = inlined_call_operand.vmem [shape: bf16[2,8,32], index: 0, kind: input, shape index: {}]   ;;  %s979_s1 = inlined_call_operand.vmem [shape: bf16[2,32,8], index: 1, kind: input, shape index: {}]   ;;  %s980_s2 = inlined_call_operand.vmem [shape: bf16[2,8,128], index: 2, kind: input, shape index: {}]   ;;  %s981_s3 = inlined_call_operand.vmem [shape: s8[2,8,8], index: 3, kind: input, shape index: {}]   ;;  %s982_s4 = inlined_call_operand.hbm [shape: f32[2,8,128], index: 4, kind: output, shape index: {}]  }
   0x1   :  { %11 = vsyncpa [#allocation6 + $0x1], 0  ;;  %s854_s15 = smov 0   ;;  %s856_s16 = smov 0  }
   0x2   :  { %s858_s17 = smov 0   ;;  %s860_s18 = smov 0  }
   0x3   :  { %s862_s19 = smov 0   ;;  %s864_s20 = smov 0  }
   0x4 LB: > { %s638_s21 = sadd.s32 4294967295, %s822_s20   ;;  %s639_s22 = sadd.s32 4294967294, %s822_s20   ;;  %s822_s20 = sphi %s864_s20, %s17_s20   ;;  %s818_s19 = sphi %s862_s19, %s989_s19   ;;  %s814_s18 = sphi %s860_s18, %s988_s18   ;;  %s810_s17 = sphi %s858_s17, %s987_s17   ;;  %s806_s16 = sphi %s856_s16, %s986_s16   ;;  %s802_s15 = sphi %s854_s15, %s985_s15  }
   0x5   : > { %s36_s23 = sadd.s32 1, %s818_s19  ;;  %s159_s24 = sadd.s32 1, %s810_s17 }
   0x6   : > { %p38_p0 = scmp.ge.s32.totalorder %s36_s23, 2  ;;  %p169_p1 = scmp.ne.s32.totalorder %s810_s17, %s806_s16 }
   0x7   : > { %p170_p2 = scmp.eq.s32.totalorder %s638_s21, 1  ;;  %p175_p3 = scmp.ne.s32.totalorder %s806_s16, %s802_s15 }
   0x8   : > { %s991_s23 = smov (%p38_p0, %s36_s23), 0  ;;  %p176_p5 = scmp.eq.s32.totalorder %s639_s22, 1 }
   0x9   : > { %p894_p4 = por %p170_p2, %p169_p1  ;;  %s154_s26 = ssub.s32 %s818_s19, %s991_s23 }
   0xa   : > { %p642_p6 = scmp.ge.s32.totalorder %s822_s20, 1  ;;  %p157_p7 = scmp.eq.s32.totalorder %s154_s26, 0 }
   0xb   : > { %p901_p8 = por %p176_p5, %p175_p3  ;;  %p238_p9 = scmp.lt.s32.totalorder %s822_s20, 3 }
   0xc   : > { %s907_s28 = scalar_select %p157_p7, %s810_s17, %s159_s24  }
   0xd   : > { %p239_p10 = pnand %p642_p6, %p238_p9 }
   0xe   : > { %p291_p11 = scmp.lt.s32.totalorder (!%p239_p10), %s814_s18, 1  ;;  %s654_s5 = sshll.u32 (!%p239_p10), %s814_s18, 7 }
   0xf   : > { %242 = sbr.rel (%p239_p10) target bundleno = 811 (0x32b), region = 36  ;;  %s511_s10 = scalar_lea.hbm (!%p239_p10), %s982_s4, %s654_s5 }
  0x10   : > { %s828_s13 = smov (!%p239_p10), [#allocation5]  }
  0x11   : > { %s750_s14 = sshll.u32 (!%p239_p10), %s828_s13, 4  ;;  %s751_s14 = int_to_ptr.vmem [resolvable:$false] %s750_s14 }
  0x14   : > { %v824_v0 = vmov 0.0   ;;  %vm825_vm0 = vmmov 0   ;;  %s911_s29 = scalar_select %p291_p11, %s814_s18, 1  ;;  %vm351_vm1 = vcmask 261120   ;;  %v826_v5 = vmov 0  }
  0x15   : > { %663 = vmatprep.subr.bf16.mxu0 %v824_v0  ;;  %667 = vmatprep.mubr.msk.bf16.mxu0 %vm825_vm0, %v824_v0  ;;  %vm330_vm3 = vcmask 7168   ;;  %v827_v7 = vmov -1e+30   ;;  %vm402_vm5 = vcmask 64512   ;;  %vm438_vm6 = vcmask 1043456   ;;  %s752_s18 = scalar_lea.vmem %s751_s14, 256 }
  0x16   : > { %671 = vmatprep.subr.bf16.mxu1 %v824_v0  ;;  %673 = vmatprep.mubr.msk.bf16.mxu1 %vm825_vm0, %v824_v0  ;;  %s657_s30 = sshll.u32 %s911_s29, 4  ;;  %s644_s8 = sshll.u32 %s911_s29, 2  ;;  %331 = vst.msk [vmem:[#allocation2] sm:$0xff] %vm330_vm3, %v827_v7  ;;  %332 = vst.msk [vmem:[#allocation3] sm:$0xff] %vm330_vm3, %v824_v0 }
  0x17   : > { %s305_s7 = scalar_lea.vmem %s979_s1, %s657_s30  ;;  %s297_s11 = scalar_lea.vmem %s978_s0, %s644_s8  ;;  %736 = vset.pattern.permute.xlu0 %v826_v5  ;;  %737 = vset.pattern.permute.xlu1 %v826_v5 }
  0x18   : > { %v738_v1 = vld [vmem:[%s305_s7 + $0x8] sm:$0xff]   ;;  %v739_v2 = vld [vmem:[%s305_s7] sm:$0xff]   ;;  %s648_s12 = sshll.u32 %s911_s29, 1  ;;  %s312_s26 = scalar_lea.vmem %s980_s2, %s644_s8 }
  0x19   : > { %664 = vmatpush3.bf16.msra.mxu0 %v738_v1  ;;  %v334_v3 = vld [vmem:[%s297_s11] sm:$0xf]  ;;  %s322_s21 = scalar_lea.vmem %s981_s3, %s648_s12  ;;  %s288_s29 = sand.u32 1, %s806_s16  }
  0x1a   : > { %665 = vmatprep.subr.bf16.mxu0 %v824_v0  ;;  %v395_v4 = vld [vmem:[%s322_s21] sm:$0x3]  ;;  %s643_s30 = sshll.u32 %s288_s29, 3  ;;  %s499_s11 = scalar_lea.sflag [#allocation6], %s288_s29 }
  0x1b   : > { %vm396_vm2 = vnez %v395_v4  ;;  %v434_v19 = vld [vmem:[%s312_s26] sm:$0xf]  ;;  %s290_s6 = scalar_lea.vmem [#allocation5], %s643_s30 }
  0x1c   : > { %v397_v6 = vsel %vm396_vm2, 16843009, %v826_v5  ;;  %v440_v20 = vsel %vm438_vm6, %v434_v19, 0  ;;  %s513_s7 = sshll.u32 %s290_s6, 4  ;;  %s514_s7 = int_to_ptr.vmem [resolvable:$true] %s513_s7 }
  0x1d   : > { %666 = vmatpush3.bf16.msra.mxu0 %v739_v2  ;;  %v398_v8 = vunpack.c.0.s8 %v397_v6  ;;  %v401_v15 = vld [vmem:[#allocation2] sm:$0xff]  ;;  %672 = vmatpush3.bf16.msra.mxu1 %v440_v20  ;;  %v418_v29 = vld [vmem:[#allocation3] sm:$0xff]  ;;  %s746_s12 = scalar_lea.vmem %s514_s7, 128  ;;  %p753_p1 = scmp.lt.s32.totalorder %s514_s7, %s751_s14 }
  0x1e   : > { %p747_p12 = scmp.ne.s32.totalorder %s514_s7, %s746_s12  ;;  %p754_p2 = scmp.lt.s32.totalorder %s752_s18, %s746_s12 }
  0x1f   : > { %vm399_vm4 = vcmp.ne.s32.totalorder %v398_v8, 0 }
  0x20   : > { %668 = vmatmul.mubr.msk.bf16.vlgmr.msra.gmra.mxu0 %vm351_vm1, %v334_v3  ;;  %p748_p13 = pnand %p747_p12, %p894_p4  ;;  %p755_p3 = por %p754_p2, %p753_p1 }
  0x22   : > { %p749_p0 = pneg %p748_p13 }
  0x24   : > { %p756_p5 = pnand %p755_p3, %p749_p0 }
  0xe0   : > { %v389_v9 = vpop.f32.mrf.mxu0 }
  0xe1   : > { %v400_v10 = vsel %vm399_vm4, %v389_v9, -1e+30 }
  0xe2   : > { %v669_v11 = vpop.f32.mrf.mxu0  ;;  %v403_v12 = vsel %vm402_vm5, %v400_v10, -inf }
  0xe3   : > { %404 = vmax.xlane.f32.xlu0 %v403_v12 }
  0xe4   : > { %v392_v13 = vpop.f32.mrf.mxu0 }
  0xe6   : > { %v670_v14 = vpop.f32.mrf.mxu0 }
 0x16c   : > { %v405_v16 = vpop.xlane.xlu0 %404 }
 0x16d   : > { %v406_v17 = vmax.f32 %v401_v15, %v405_v16 }
 0x16f   : > { %v407_v18 = vsub.f32 %v401_v15, %v406_v17  ;;  %484 = vst.msk [vmem:[#allocation2] sm:$0xff] %vm330_vm3, %v406_v17  ;;  %412 = vperm.xlu0 %736, %v406_v17  }
 0x171   : > { %v408_v25 = vmul.f32 1.442695, %v407_v18 }
 0x1ea   : > { %v413_v21 = vpop.permute.xlu0 %412 }
 0x1eb   : > { %v415_v22 = vsub.f32 %v400_v10, %v413_v21 }
 0x1ed   : > { %v416_v23 = vmul.f32 1.442695, %v415_v22 }
 0x1ef   : > { %740 = vpow2.f32 %v416_v23 }
 0x1f0   : > { %742 = vpow2.f32 %v408_v25 }
 0x1fc   : > { %v741_v24 = vpop.eup %740 }
 0x1fd   : > { %v420_v26 = vsel %vm402_vm5, %v741_v24, 0.0  ;;  %v433_v27 = vpack.c.bf16 %v741_v24, %v741_v24  ;;  %v743_v28 = vpop.eup %742 }
 0x1fe   : > { %421 = vadd.xlane.f32.xlu1 %v420_v26  ;;  %v419_v30 = vmul.f32 %v743_v28, %v418_v29 }
 0x1ff   : > { %674 = vmatmul.mubr.msk.bf16.vlgmr.msra.gmra.mxu1 %vm402_vm5, %v433_v27 }
 0x20f   : > { %429 = vperm.xlu1 %737, %v743_v28  }
 0x287   : > { %v422_v31 = vpop.xlane.xlu1 %421 }
 0x288   : > { %v423_v32 = vadd.f32 %v422_v31, %v419_v30 }
 0x28a   : > { %425 = vst.msk [vmem:[#allocation3] sm:$0xff] %vm330_vm3, %v423_v32 }
 0x28b   : > { %v430_v39 = vpop.permute.xlu1 %429 }
 0x28c   : > { %v432_v40 = vmul.f32 0.0, %v430_v39 }
 0x291   : > { %v488_v33 = vld [vmem:[#allocation3] sm:$0xff] }
 0x292   : > { %744 = vrcp.f32 %v488_v33 }
 0x29f   : > { %v745_v34 = vpop.eup %744 }
 0x2a0   : > { %493 = vperm.xlu1 %737, %v745_v34  }
 0x2bf   : > { %v476_v35 = vpop.f32.mrf.mxu1 }
 0x2c0   : > { %v482_v41 = vadd.f32 %v476_v35, %v432_v40 }
 0x2c1   : > { %v675_v36 = vpop.f32.mrf.mxu1 }
 0x2c3   : > { %v479_v37 = vpop.f32.mrf.mxu1 }
 0x2c5   : > { %v676_v38 = vpop.f32.mrf.mxu1 }
 0x31b   : > { %v494_v42 = vpop.permute.xlu1 %493 }
 0x31c   : > { %v496_v43 = vmul.f32 %v494_v42, %v482_v41 }
 0x31e   : > { %497 = vst [vmem:[%s290_s6] sm:$0xff] %v496_v43 }
 0x31f   : > { %759 = shalt.err (!%p756_p5)
}
 0x320   : > { %s760_s21 = scalar_lea.hbm %s511_s10, 128  ;;  %s764_s26 = scalar_lea.hbm %s982_s4, 256 }
 0x321   : > { %p761_p6 = scmp.ne.s32.totalorder %s511_s10, %s760_s21  ;;  %p765_p10 = scmp.lt.s32.totalorder %s511_s10, %s982_s4 }
 0x322   : > { %p766_p11 = scmp.lt.s32.totalorder %s764_s26, %s760_s21 }
 0x323   : > { %p762_p7 = pnand %p761_p6, %p894_p4 }
 0x324   : > { %p767_p12 = por %p766_p11, %p765_p10 }
 0x325   : > { %p763_p9 = pneg %p762_p7 }
 0x327   : > { %p768_p13 = pnand %p767_p12, %p763_p9 }
 0x329   : > { %771 = shalt.err (!%p768_p13)
}
 0x32a   : > { %677 = dma.vmem_to_hbm [thread:$0]  (%p894_p4), %s514_s7, 128, %s511_s10, %s499_s11  }
 0x32b PF: > { %p683_p0 = scmp.ge.s32.totalorder %s822_s20, 2  ;;  %s525_s5 = sand.u32 1, %s802_s15  }
 0x32c   : > { %s526_s6 = scalar_lea.sflag [#allocation6], %s525_s5 }
 0x32d   : > { %p680_p1 = pnand %p683_p0, %p901_p8 }
 0x32f   : > { %p681_p2 = pneg %p680_p1 }
 0x331   : > { %797 = dma.done.wait (%p681_p2), %s526_s6, 128  }
 0x332   : > { %799 = vsyncadd (%p681_p2), %s526_s6, 4294967168  ;;  %s17_s20 = sadd.s32 1, %s822_s20   ;;  %s985_s15 = smov %s806_s16 }
 0x333   : > { %p14_p3 = scmp.ge.s32.totalorder %s17_s20, 4   ;;  %s986_s16 = smov %s810_s17 }
 0x334   : > { %s987_s17 = smov %s907_s28  ;;  %s988_s18 = smov %s818_s19 }
 0x335   : > { %s989_s19 = smov %s991_s23  ;;  %16 = sbr.rel (!%p14_p3) target bundleno = 4 (0x4), region = 88 }
 0x33a   :  { %531 = vsyncpa [#allocation6], 1 }
 0x33b   :  { %533 = vsyncpa [#allocation6 + $0x1], 1 }

</bundles_post_ra>
